<compile_context>
chip_gen: v7x
topology: tpu7x:2x2x1
jax: 0.10.0
libtpu: 0.0.40
codegen_flags: <defaults>
</compile_context>

<pallas_src>
import jax
import jax.numpy as jnp
from jax.experimental import pallas as pl
from jax.experimental.pallas import tpu as pltpu

LANES = 128
SUBLANES = 8
ROW_GRANULE = 32                      # multiple of every dtype's sublane tile (f32:8, bf16:16, i8/bool:32)
MIN_KERNEL_ROWS = ROW_GRANULE         # below this, plain jnp is cheaper than a kernel launch
VMEM_BUDGET_BYTES = 8 * 1024 * 1024   # double-buffered bytes for BOTH input streams
MAX_BLOCK_ROWS = 8192


def _detect_num_tensorcores():
    """Best-effort TensorCores-per-chip.  The 2-way 'parallel' grid split only pays on
    megacore parts (v4/v5p) and v7x; any failure falls back to 1 (always correct)."""
    try:
        info = pltpu.get_tpu_info()
        for name in ("num_tensorcores", "tensorcores_per_chip", "num_cores",
                     "cores_per_chip", "core_count"):
            v = getattr(info, name, None)
            if v is None:
                continue
            try:
                v = int(v)
            except (TypeError, ValueError):
                continue
            if v > 0:
                return 2 if v >= 2 else 1
    except Exception:
        pass
    try:
        kind = jax.devices()[0].device_kind.lower()
        if ("v4" in kind) or ("v5p" in kind) or ("v7" in kind):
            return 2
    except Exception:
        pass
    return 1


def _make_dice_partial_kernel(total_rows, block_rows, inner):
    """Kernel accumulating per-(sublane, lane) partial sums of
    (sigmoid(x)*t, sigmoid(x), t) into a resident (3, 8, 128) f32 scratch."""

    def kernel(x_ref, t_ref, out_ref, acc_ref):
        c = pl.program_id(0)            # core axis ("parallel")
        i = pl.program_id(1)            # reduction axis ("arbitrary")
        ni = pl.num_programs(1)

        @pl.when(i == 0)
        def _init():
            acc_ref[...] = jnp.zeros_like(acc_ref)

        # Unclamped global block index.  The index_map clamps so the DMA never starts
        # past the array; the mask below uses the UNclamped value so duplicate blocks
        # contribute exactly zero.
        b = c * inner + i
        row0 = b * block_rows

        x = x_ref[...].astype(jnp.float32)          # (block_rows, LANES), in-register upcast
        t = t_ref[...].astype(jnp.float32)
        # Sigmoid as a single EUP transcendental (tanh form).
        s = 0.5 * jnp.tanh(0.5 * x) + 0.5

        def accumulate(s_v, t_v):
            # (block_rows, 128) -> (block_rows//8, 8, 128) is a tile-preserving view, so
            # the axis-0 sums are pure VPU vreg adds (no XLU, no masked RMW stores).
            s3 = s_v.reshape(block_rows // SUBLANES, SUBLANES, LANES)
            t3 = t_v.reshape(block_rows // SUBLANES, SUBLANES, LANES)
            acc_ref[0] += jnp.sum(s3 * t3, axis=0)   # intersection partials
            acc_ref[1] += jnp.sum(s3, axis=0)        # sum(sigmoid(x)) partials
            acc_ref[2] += jnp.sum(t3, axis=0)        # sum(targets) partials

        # Only the ragged last block (or a duplicate block) needs masking.
        ragged = row0 + block_rows > total_rows

        @pl.when(jnp.logical_not(ragged))
        def _full_tile():
            accumulate(s, t)

        @pl.when(ragged)
        def _masked_tile():
            rows_left = total_rows - row0            # <= 0 for duplicate blocks
            m = jax.lax.broadcasted_iota(jnp.int32, (block_rows, LANES), 0) < rows_left
            accumulate(jnp.where(m, s, 0.0), jnp.where(m, t, 0.0))

        @pl.when(i == ni - 1)
        def _finalize():
            # Single cross-sublane reduce per core, once per call.
            out_ref[0] = jnp.sum(acc_ref[...], axis=1)   # (3, LANES)

    return kernel


def _dice_partial_sums(x2, t2, num_cores, block_rows):
    """Run the Pallas kernel over a (rows, 128) view; returns f32[3] = (inter, sum_s, sum_t)."""
    total_rows = x2.shape[0]
    total_blocks = pl.cdiv(total_rows, block_rows)
    nc = max(1, min(int(num_cores), total_blocks))
    inner = pl.cdiv(total_blocks, nc)

    def in_map(c, i):
        # Clamp so a DMA never starts past the end of the array; duplicate blocks are
        # zeroed by the in-kernel mask (which uses the unclamped index).
        return (jnp.minimum(c * inner + i, total_blocks - 1), 0)

    kernel = _make_dice_partial_kernel(total_rows, block_rows, inner)

    partials = pl.pallas_call(
        kernel,
        out_shape=jax.ShapeDtypeStruct((nc, 3, LANES), jnp.float32),
        grid_spec=pltpu.PrefetchScalarGridSpec(
            num_scalar_prefetch=0,
            grid=(nc, inner),
            in_specs=[pl.BlockSpec((block_rows, LANES), in_map),
                      pl.BlockSpec((block_rows, LANES), in_map)],
            out_specs=pl.BlockSpec((1, 3, LANES), lambda c, i: (c, 0, 0)),
            scratch_shapes=[pltpu.VMEM((3, SUBLANES, LANES), jnp.float32)],
        ),
        compiler_params=pltpu.CompilerParams(
            dimension_semantics=("parallel", "arbitrary")),
    )(x2, t2)

    # Tiny epilogue: combine per-core, per-lane partials (<= 2*3*128 floats).
    return jnp.sum(partials, axis=(0, 2))


def _pick_block_rows(kernel_rows, x_dtype, t_dtype, requested=None):
    if requested is None:
        per_row = 2 * LANES * (jnp.dtype(x_dtype).itemsize + jnp.dtype(t_dtype).itemsize)
        br = VMEM_BUDGET_BYTES // per_row
    else:
        br = int(requested)
    br = max(ROW_GRANULE, min(br, MAX_BLOCK_ROWS))
    br = (br // ROW_GRANULE) * ROW_GRANULE
    # Never larger than the data: keeps every block's start strictly in-bounds.
    br = min(br, (kernel_rows // ROW_GRANULE) * ROW_GRANULE)
    return br


def dice_loss(inputs, targets, smooth=1.0, block_rows=None, num_cores=None):
    """Pallas TPU DiceLoss.forward:
        1 - (2*sum(sigmoid(x)*t) + smooth) / (sum(sigmoid(x)) + sum(t) + smooth)

    Inputs/targets may be any shape and any float/int/bool dtype; both are upcast to
    f32 in-register inside the kernel — feed bf16/int8/bool targets directly to cut
    HBM traffic, do NOT cast in the caller.
    """
    x = jnp.ravel(inputs)
    t = jnp.ravel(targets)
    if x.shape != t.shape:
        raise ValueError("inputs and targets must have the same number of elements")
    n = x.shape[0]

    if num_cores is None:
        num_cores = _detect_num_tensorcores()

    full_rows = n // LANES
    kernel_rows = full_rows if full_rows >= MIN_KERNEL_ROWS else 0
    main = kernel_rows * LANES

    inter = jnp.float32(0.0)
    s_sum = jnp.float32(0.0)
    t_sum = jnp.float32(0.0)

    if kernel_rows > 0:
        br = _pick_block_rows(kernel_rows, x.dtype, t.dtype, block_rows)
        x2 = x[:main].reshape(kernel_rows, LANES)
        t2 = t[:main].reshape(kernel_rows, LANES)
        totals = _dice_partial_sums(x2, t2, num_cores, br)
        inter, s_sum, t_sum = totals[0], totals[1], totals[2]

    if main < n:
        # Sub-lane-row tail (< 128 elems) or an input too small for a kernel launch
        # (< 32*128 elems): plain jnp, negligible cost, no padding anywhere.
        xt = x[main:].astype(jnp.float32)
        tt = t[main:].astype(jnp.float32)
        st = jax.nn.sigmoid(xt)
        inter = inter + jnp.sum(st * tt)
        s_sum = s_sum + jnp.sum(st)
        t_sum = t_sum + jnp.sum(tt)

    dice = (2.0 * inter + smooth) / (s_sum + t_sum + smooth)
    return (1.0 - dice).astype(jnp.float32)


def dice_loss_ref(inputs, targets, smooth=1.0):
    s = jax.nn.sigmoid(jnp.ravel(inputs).astype(jnp.float32))
    t = jnp.ravel(targets).astype(jnp.float32)
    inter = jnp.sum(s * t)
    dice = (2.0 * inter + smooth) / (jnp.sum(s) + jnp.sum(t) + smooth)
    return 1.0 - dice


if __name__ == "__main__":
    key = jax.random.PRNGKey(0)
    k1, k2, k3, k4 = jax.random.split(key, 4)

    # UNet-style segmentation logits / binary masks (NCHW): batch=2, channels=4, spatial=32.
    x = jax.random.normal(k1, (2, 4, 32, 32), dtype=jnp.float32)
    tgt = (jax.random.uniform(k2, (2, 4, 32, 32)) > 0.5).astype(jnp.float32)
    loss = dice_loss(x, tgt, smooth=1.0)
    jax.block_until_ready(loss)
    ref = dice_loss_ref(x, tgt, smooth=1.0)
    assert jnp.allclose(loss, ref, atol=1e-5, rtol=1e-5), (loss, ref)

    # Native bf16 logits, f32 targets: no wrapper cast, kernel upcasts in-register.
    x_bf16 = x.astype(jnp.bfloat16)
    loss_b = dice_loss(x_bf16, tgt, smooth=1.0)
    jax.block_until_ready(loss_b)
    ref_b = dice_loss_ref(x_bf16, tgt, smooth=1.0)
    assert jnp.allclose(loss_b, ref_b, atol=1e-4, rtol=1e-4), (loss_b, ref_b)

    # Multi-block grid with a ragged (iota-masked) last block: n = 32000 -> 250 lane rows.
    x3 = jax.random.normal(k3, (2, 4, 40, 100), dtype=jnp.float32)
    t3 = (jax.random.uniform(k4, (2, 4, 40, 100)) > 0.5).astype(jnp.float32)
    loss3 = dice_loss(x3, t3, smooth=1.0)
    jax.block_until_ready(loss3)
    ref3 = dice_loss_ref(x3, t3, smooth=1.0)
    assert jnp.allclose(loss3, ref3, atol=1e-5, rtol=1e-5), (loss3, ref3)

    # Element count not a multiple of 128: kernel main part + tiny jnp tail (n = 8200).
    x4 = jax.random.normal(k1, (2, 4, 25, 41), dtype=jnp.float32)
    t4 = (jax.random.uniform(k2, (2, 4, 25, 41)) > 0.5).astype(jnp.float32)
    loss4 = dice_loss(x4, t4, smooth=1.0)
    jax.block_until_ready(loss4)
    ref4 = dice_loss_ref(x4, t4, smooth=1.0)
    assert jnp.allclose(loss4, ref4, atol=1e-5, rtol=1e-5), (loss4, ref4)

    print("KERNEL_OK")
</pallas_src>

<mosaic_0001>
module attributes {stable_mosaic.version = 11 : i64} {
  func.func @kernel(%arg0: i32, %arg1: i32, %arg2: memref<64x128xf32, #tpu.memory_space<vmem>>, %arg3: memref<64x128xf32, #tpu.memory_space<vmem>>, %arg4: memref<1x3x128xf32, #tpu.memory_space<vmem>>, %arg5: memref<3x8x128xf32, #tpu.memory_space<vmem>>) attributes {dimension_semantics = [#tpu.dimension_semantics<parallel>, #tpu.dimension_semantics<arbitrary>], iteration_bounds = array<i64: 1, 1>, scalar_prefetch = 0 : i64, scratch_operands = 1 : i64, tpu.core_type = #tpu.core_type<tc>, window_params = [{transform_indices = @transform_0, window_bounds = array<i64: 64, 128>}, {transform_indices = @transform_1, window_bounds = array<i64: 64, 128>}, {transform_indices = @transform_2, window_bounds = array<i64: 1, 3, 128>}]} {
    %c0_i32 = arith.constant 0 : i32
    %0 = arith.cmpi eq, %arg1, %c0_i32 : i32
    %1 = arith.extui %0 : i1 to i32
    %c0_i32_0 = arith.constant 0 : i32
    %2 = arith.cmpi ne, %1, %c0_i32_0 : i32
    scf.if %2 {
      %cst_12 = arith.constant 0.000000e+00 : f32
      %25 = vector.broadcast %cst_12 : f32 to vector<3x8x128xf32>
      %c0_13 = arith.constant 0 : index
      %c0_14 = arith.constant 0 : index
      %c0_15 = arith.constant 0 : index
      %26 = vector.load %arg5[%c0_13, %c0_14, %c0_15] : memref<3x8x128xf32, #tpu.memory_space<vmem>>, vector<3x8x128xf32>
      tpu.vector_store %arg5[%c0_13, %c0_14, %c0_15], %25 {strides = array<i32>} : memref<3x8x128xf32, #tpu.memory_space<vmem>>, vector<3x8x128xf32>,
    } else {
    }
    %c1_i32 = arith.constant 1 : i32
    %3 = arith.muli %arg0, %c1_i32 : i32
    %4 = arith.addi %3, %arg1 : i32
    %c64_i32 = arith.constant 64 : i32
    %5 = arith.muli %4, %c64_i32 : i32
    %c0 = arith.constant 0 : index
    %c0_1 = arith.constant 0 : index
    %6 = vector.load %arg2[%c0, %c0_1] : memref<64x128xf32, #tpu.memory_space<vmem>>, vector<64x128xf32>
    %c0_2 = arith.constant 0 : index
    %c0_3 = arith.constant 0 : index
    %7 = vector.load %arg3[%c0_2, %c0_3] : memref<64x128xf32, #tpu.memory_space<vmem>>, vector<64x128xf32>
    %cst = arith.constant 5.000000e-01 : f32
    %8 = vector.broadcast %cst : f32 to vector<64x128xf32>
    %9 = arith.mulf %8, %6 : vector<64x128xf32>
    %10 = math.tanh %9 : vector<64x128xf32>
    %cst_4 = arith.constant 5.000000e-01 : f32
    %11 = vector.broadcast %cst_4 : f32 to vector<64x128xf32>
    %12 = arith.mulf %11, %10 : vector<64x128xf32>
    %cst_5 = arith.constant 5.000000e-01 : f32
    %13 = vector.broadcast %cst_5 : f32 to vector<64x128xf32>
    %14 = arith.addf %12, %13 : vector<64x128xf32>
    %c64_i32_6 = arith.constant 64 : i32
    %15 = arith.addi %5, %c64_i32_6 : i32
    %c64_i32_7 = arith.constant 64 : i32
    %16 = arith.cmpi sgt, %15, %c64_i32_7 : i32
    %true = arith.constant true
    %17 = arith.xori %16, %true : i1
    %18 = arith.extui %17 : i1 to i32
    %c0_i32_8 = arith.constant 0 : i32
    %19 = arith.cmpi ne, %18, %c0_i32_8 : i32
    scf.if %19 {
      %25 = vector.shape_cast %14 : vector<64x128xf32> to vector<8x8x128xf32>
      %26 = vector.shape_cast %7 : vector<64x128xf32> to vector<8x8x128xf32>
      %c0_12 = arith.constant 0 : index
      %c0_13 = arith.constant 0 : index
      %c0_14 = arith.constant 0 : index
      %27 = vector.load %arg5[%c0_12, %c0_13, %c0_14] : memref<3x8x128xf32, #tpu.memory_space<vmem>>, vector<1x8x128xf32>
      %28 = vector.shape_cast %27 : vector<1x8x128xf32> to vector<8x128xf32>
      %29 = arith.mulf %25, %26 : vector<8x8x128xf32>
      %cst_15 = arith.constant dense<0.000000e+00> : vector<8x128xf32>
      %30 = vector.multi_reduction <add>, %29, %cst_15 [0] : vector<8x8x128xf32> to vector<8x128xf32>
      %31 = arith.addf %28, %30 : vector<8x128xf32>
      %c0_16 = arith.constant 0 : index
      %c0_17 = arith.constant 0 : index
      %c0_18 = arith.constant 0 : index
      %32 = vector.load %arg5[%c0_16, %c0_17, %c0_18] : memref<3x8x128xf32, #tpu.memory_space<vmem>>, vector<1x8x128xf32>
      %33 = vector.shape_cast %32 : vector<1x8x128xf32> to vector<8x128xf32>
      %34 = vector.shape_cast %31 : vector<8x128xf32> to vector<1x8x128xf32>
      tpu.vector_store %arg5[%c0_16, %c0_17, %c0_18], %34 {strides = array<i32>} : memref<3x8x128xf32, #tpu.memory_space<vmem>>, vector<1x8x128xf32>,
      %c1 = arith.constant 1 : index
      %c0_19 = arith.constant 0 : index
      %c0_20 = arith.constant 0 : index
      %35 = vector.load %arg5[%c1, %c0_19, %c0_20] : memref<3x8x128xf32, #tpu.memory_space<vmem>>, vector<1x8x128xf32>
      %36 = vector.shape_cast %35 : vector<1x8x128xf32> to vector<8x128xf32>
      %cst_21 = arith.constant dense<0.000000e+00> : vector<8x128xf32>
      %37 = vector.multi_reduction <add>, %25, %cst_21 [0] : vector<8x8x128xf32> to vector<8x128xf32>
      %38 = arith.addf %36, %37 : vector<8x128xf32>
      %c1_22 = arith.constant 1 : index
      %c0_23 = arith.constant 0 : index
      %c0_24 = arith.constant 0 : index
      %39 = vector.load %arg5[%c1_22, %c0_23, %c0_24] : memref<3x8x128xf32, #tpu.memory_space<vmem>>, vector<1x8x128xf32>
      %40 = vector.shape_cast %39 : vector<1x8x128xf32> to vector<8x128xf32>
      %41 = vector.shape_cast %38 : vector<8x128xf32> to vector<1x8x128xf32>
      tpu.vector_store %arg5[%c1_22, %c0_23, %c0_24], %41 {strides = array<i32>} : memref<3x8x128xf32, #tpu.memory_space<vmem>>, vector<1x8x128xf32>,
      %c2 = arith.constant 2 : index
      %c0_25 = arith.constant 0 : index
      %c0_26 = arith.constant 0 : index
      %42 = vector.load %arg5[%c2, %c0_25, %c0_26] : memref<3x8x128xf32, #tpu.memory_space<vmem>>, vector<1x8x128xf32>
      %43 = vector.shape_cast %42 : vector<1x8x128xf32> to vector<8x128xf32>
      %cst_27 = arith.constant dense<0.000000e+00> : vector<8x128xf32>
      %44 = vector.multi_reduction <add>, %26, %cst_27 [0] : vector<8x8x128xf32> to vector<8x128xf32>
      %45 = arith.addf %43, %44 : vector<8x128xf32>
      %c2_28 = arith.constant 2 : index
      %c0_29 = arith.constant 0 : index
      %c0_30 = arith.constant 0 : index
      %46 = vector.load %arg5[%c2_28, %c0_29, %c0_30] : memref<3x8x128xf32, #tpu.memory_space<vmem>>, vector<1x8x128xf32>
      %47 = vector.shape_cast %46 : vector<1x8x128xf32> to vector<8x128xf32>
      %48 = vector.shape_cast %45 : vector<8x128xf32> to vector<1x8x128xf32>
      tpu.vector_store %arg5[%c2_28, %c0_29, %c0_30], %48 {strides = array<i32>} : memref<3x8x128xf32, #tpu.memory_space<vmem>>, vector<1x8x128xf32>,
    } else {
    }
    %20 = arith.extui %16 : i1 to i32
    %c0_i32_9 = arith.constant 0 : i32
    %21 = arith.cmpi ne, %20, %c0_i32_9 : i32
    scf.if %21 {
      %c64_i32_12 = arith.constant 64 : i32
      %25 = arith.subi %c64_i32_12, %5 : i32
      %26 = tpu.iota {dimensions = array<i32: 0>} : vector<64x128xi32>
      %27 = vector.broadcast %25 : i32 to vector<64x128xi32>
      %28 = arith.cmpi slt, %26, %27 : vector<64x128xi32>
      %cst_13 = arith.constant 0.000000e+00 : f32
      %29 = vector.broadcast %cst_13 : f32 to vector<64x128xf32>
      %30 = arith.select %28, %14, %29 : vector<64x128xi1>, vector<64x128xf32>
      %cst_14 = arith.constant 0.000000e+00 : f32
      %31 = vector.broadcast %cst_14 : f32 to vector<64x128xf32>
      %32 = arith.select %28, %7, %31 : vector<64x128xi1>, vector<64x128xf32>
      %33 = vector.shape_cast %30 : vector<64x128xf32> to vector<8x8x128xf32>
      %34 = vector.shape_cast %32 : vector<64x128xf32> to vector<8x8x128xf32>
      %c0_15 = arith.constant 0 : index
      %c0_16 = arith.constant 0 : index
      %c0_17 = arith.constant 0 : index
      %35 = vector.load %arg5[%c0_15, %c0_16, %c0_17] : memref<3x8x128xf32, #tpu.memory_space<vmem>>, vector<1x8x128xf32>
      %36 = vector.shape_cast %35 : vector<1x8x128xf32> to vector<8x128xf32>
      %37 = arith.mulf %33, %34 : vector<8x8x128xf32>
      %cst_18 = arith.constant dense<0.000000e+00> : vector<8x128xf32>
      %38 = vector.multi_reduction <add>, %37, %cst_18 [0] : vector<8x8x128xf32> to vector<8x128xf32>
      %39 = arith.addf %36, %38 : vector<8x128xf32>
      %c0_19 = arith.constant 0 : index
      %c0_20 = arith.constant 0 : index
      %c0_21 = arith.constant 0 : index
      %40 = vector.load %arg5[%c0_19, %c0_20, %c0_21] : memref<3x8x128xf32, #tpu.memory_space<vmem>>, vector<1x8x128xf32>
      %41 = vector.shape_cast %40 : vector<1x8x128xf32> to vector<8x128xf32>
      %42 = vector.shape_cast %39 : vector<8x128xf32> to vector<1x8x128xf32>
      tpu.vector_store %arg5[%c0_19, %c0_20, %c0_21], %42 {strides = array<i32>} : memref<3x8x128xf32, #tpu.memory_space<vmem>>, vector<1x8x128xf32>,
      %c1 = arith.constant 1 : index
      %c0_22 = arith.constant 0 : index
      %c0_23 = arith.constant 0 : index
      %43 = vector.load %arg5[%c1, %c0_22, %c0_23] : memref<3x8x128xf32, #tpu.memory_space<vmem>>, vector<1x8x128xf32>
      %44 = vector.shape_cast %43 : vector<1x8x128xf32> to vector<8x128xf32>
      %cst_24 = arith.constant dense<0.000000e+00> : vector<8x128xf32>
      %45 = vector.multi_reduction <add>, %33, %cst_24 [0] : vector<8x8x128xf32> to vector<8x128xf32>
      %46 = arith.addf %44, %45 : vector<8x128xf32>
      %c1_25 = arith.constant 1 : index
      %c0_26 = arith.constant 0 : index
      %c0_27 = arith.constant 0 : index
      %47 = vector.load %arg5[%c1_25, %c0_26, %c0_27] : memref<3x8x128xf32, #tpu.memory_space<vmem>>, vector<1x8x128xf32>
      %48 = vector.shape_cast %47 : vector<1x8x128xf32> to vector<8x128xf32>
      %49 = vector.shape_cast %46 : vector<8x128xf32> to vector<1x8x128xf32>
      tpu.vector_store %arg5[%c1_25, %c0_26, %c0_27], %49 {strides = array<i32>} : memref<3x8x128xf32, #tpu.memory_space<vmem>>, vector<1x8x128xf32>,
      %c2 = arith.constant 2 : index
      %c0_28 = arith.constant 0 : index
      %c0_29 = arith.constant 0 : index
      %50 = vector.load %arg5[%c2, %c0_28, %c0_29] : memref<3x8x128xf32, #tpu.memory_space<vmem>>, vector<1x8x128xf32>
      %51 = vector.shape_cast %50 : vector<1x8x128xf32> to vector<8x128xf32>
      %cst_30 = arith.constant dense<0.000000e+00> : vector<8x128xf32>
      %52 = vector.multi_reduction <add>, %34, %cst_30 [0] : vector<8x8x128xf32> to vector<8x128xf32>
      %53 = arith.addf %51, %52 : vector<8x128xf32>
      %c2_31 = arith.constant 2 : index
      %c0_32 = arith.constant 0 : index
      %c0_33 = arith.constant 0 : index
      %54 = vector.load %arg5[%c2_31, %c0_32, %c0_33] : memref<3x8x128xf32, #tpu.memory_space<vmem>>, vector<1x8x128xf32>
      %55 = vector.shape_cast %54 : vector<1x8x128xf32> to vector<8x128xf32>
      %56 = vector.shape_cast %53 : vector<8x128xf32> to vector<1x8x128xf32>
      tpu.vector_store %arg5[%c2_31, %c0_32, %c0_33], %56 {strides = array<i32>} : memref<3x8x128xf32, #tpu.memory_space<vmem>>, vector<1x8x128xf32>,
    } else {
    }
    %c0_i32_10 = arith.constant 0 : i32
    %22 = arith.cmpi eq, %arg1, %c0_i32_10 : i32
    %23 = arith.extui %22 : i1 to i32
    %c0_i32_11 = arith.constant 0 : i32
    %24 = arith.cmpi ne, %23, %c0_i32_11 : i32
    scf.if %24 {
      %c0_12 = arith.constant 0 : index
      %c0_13 = arith.constant 0 : index
      %c0_14 = arith.constant 0 : index
      %25 = vector.load %arg5[%c0_12, %c0_13, %c0_14] : memref<3x8x128xf32, #tpu.memory_space<vmem>>, vector<3x8x128xf32>
      %cst_15 = arith.constant dense<0.000000e+00> : vector<3x128xf32>
      %26 = vector.multi_reduction <add>, %25, %cst_15 [1] : vector<3x8x128xf32> to vector<3x128xf32>
      %c0_16 = arith.constant 0 : index
      %c0_17 = arith.constant 0 : index
      %c0_18 = arith.constant 0 : index
      %27 = vector.load %arg4[%c0_16, %c0_17, %c0_18] : memref<1x3x128xf32, #tpu.memory_space<vmem>>, vector<1x3x128xf32>
      %28 = vector.shape_cast %27 : vector<1x3x128xf32> to vector<3x128xf32>
      %29 = vector.shape_cast %26 : vector<3x128xf32> to vector<1x3x128xf32>
      tpu.vector_store %arg4[%c0_16, %c0_17, %c0_18], %29 {strides = array<i32>} : memref<1x3x128xf32, #tpu.memory_space<vmem>>, vector<1x3x128xf32>,
    } else {
    }
    return
  }
  func.func @transform_0(%arg0: i32, %arg1: i32) -> (i32, i32) {
    %c1_i32 = arith.constant 1 : i32
    %0 = arith.muli %arg0, %c1_i32 : i32
    %1 = arith.addi %0, %arg1 : i32
    %c0_i32 = arith.constant 0 : i32
    %2 = arith.minsi %1, %c0_i32 : i32
    %c0_i32_0 = arith.constant 0 : i32
    %c0_i32_1 = arith.constant 0 : i32
    return %2, %c0_i32_0 : i32, i32
  }
  func.func @transform_1(%arg0: i32, %arg1: i32) -> (i32, i32) {
    %c1_i32 = arith.constant 1 : i32
    %0 = arith.muli %arg0, %c1_i32 : i32
    %1 = arith.addi %0, %arg1 : i32
    %c0_i32 = arith.constant 0 : i32
    %2 = arith.minsi %1, %c0_i32 : i32
    %c0_i32_0 = arith.constant 0 : i32
    %c0_i32_1 = arith.constant 0 : i32
    return %2, %c0_i32_0 : i32, i32
  }
  func.func @transform_2(%arg0: i32, %arg1: i32) -> (i32, i32, i32) {
    %c0_i32 = arith.constant 0 : i32
    %c0_i32_0 = arith.constant 0 : i32
    %c0_i32_1 = arith.constant 0 : i32
    return %arg0, %c0_i32, %c0_i32_0 : i32, i32, i32
  }
}

</mosaic_0001>

<bundles_post_ra>
// kernel: tpu_custom_call.1
= control target key start
LH: loop header
LB: loop body
LE: loop exit
PB: predicated region body
PF: predicated region fallthrough
CT: control target
= control target key end

     0   :  { %7 = vsyncpa [#allocation4], 0  ;;  %s397_s0 = inlined_call_operand.hbm [shape: f32[64,128], index: 0, kind: input, shape index: {}]   ;;  %s398_s1 = inlined_call_operand.hbm [shape: f32[64,128], index: 1, kind: input, shape index: {}]   ;;  %s399_s2 = inlined_call_operand.vmem [shape: f32[1,3,128], index: 2, kind: output, shape index: {}]  }
   0x1   :  { %8 = vsyncpa [#allocation6], 0  ;;  %s351_s9 = smov [#allocation3]   ;;  %s303_s13 = scalar_lea.hbm %s397_s0, 1024 }
   0x2   :  { %s20_s10 = sshll.u32 %s351_s9, 4  ;;  %p304_p0 = scmp.ne.s32.totalorder %s397_s0, %s303_s13  ;;  %s21_s10 = int_to_ptr.vmem [resolvable:$true] %s20_s10 }
   0x3   :  { %p307_p1 = scmp.lt.u32.totalorder %s303_s13, %s397_s0 }
   0x5   :  { %p309_p2 = pnand %p307_p1, %p304_p0 }
   0x7   :  { %312 = shalt.err (!%p309_p2)
}
   0x8   :  { %s313_s18 = scalar_lea.vmem %s21_s10, 1024  ;;  %p318_p4 = scmp.lt.s32.totalorder %s21_s10, %s21_s10 }
   0x9   :  { %p314_p3 = scmp.ne.s32.totalorder %s21_s10, %s313_s18  ;;  %p319_p5 = scmp.lt.s32.totalorder %s313_s18, %s313_s18 }
   0xb   :  { %p320_p6 = por %p319_p5, %p318_p4 }
   0xd   :  { %p321_p7 = pnand %p320_p6, %p314_p3 }
   0xf   :  { %324 = shalt.err (!%p321_p7)
}
  0x10   :  { %s352_s19 = smov 128   ;;  %s353_s20 = smov 8  }
  0x11   :  { %26 = dma.hbm_to_vmem [thread:$0]  %s397_s0, 1024, %s21_s10, [#allocation4], %s352_s19, %s352_s19, %s353_s20  }
  0x12   :  { %s354_s23 = smov [#allocation5]   ;;  %s325_s27 = scalar_lea.hbm %s398_s1, 1024 }
  0x13   :  { %s38_s24 = sshll.u32 %s354_s23, 4  ;;  %p326_p8 = scmp.ne.s32.totalorder %s398_s1, %s325_s27  ;;  %s39_s24 = int_to_ptr.vmem [resolvable:$true] %s38_s24 }
  0x14   :  { %p329_p9 = scmp.lt.u32.totalorder %s325_s27, %s398_s1 }
  0x16   :  { %p331_p10 = pnand %p329_p9, %p326_p8 }
  0x18   :  { %334 = shalt.err (!%p331_p10)
}
  0x19   :  { %s335_s4 = scalar_lea.vmem %s39_s24, 1024  ;;  %p340_p12 = scmp.lt.s32.totalorder %s39_s24, %s39_s24 }
  0x1a   :  { %p336_p11 = scmp.ne.s32.totalorder %s39_s24, %s335_s4  ;;  %p341_p13 = scmp.lt.s32.totalorder %s335_s4, %s335_s4 }
  0x1c   :  { %p342_p0 = por %p341_p13, %p340_p12 }
  0x1e   :  { %p343_p1 = pnand %p342_p0, %p336_p11 }
  0x20   :  { %346 = shalt.err (!%p343_p1)
}
  0x21   :  { %44 = dma.hbm_to_vmem [thread:$0]  %s398_s1, 1024, %s39_s24, [#allocation6], %s352_s19, %s352_s19, %s353_s20  }
  0x22   :  { %347 = dma.done.wait [#allocation4], 1024  }
  0x23   :  { %348 = vsyncadd [#allocation4], 4294966272 }
  0x24   :  { %349 = dma.done.wait [#allocation6], 1024  }
  0x25   :  { %350 = vsyncadd [#allocation6], 4294966272  ;;  %v68_v0 = vld [vmem:[#allocation3] sm:$0xff]  ;;  %v69_v1 = vld [vmem:[#allocation3 + $0x8] sm:$0xff]  ;;  %vm267_vm0 = vcmask 1041409   ;;  %vm269_vm1 = vcmask 1042434  }
  0x26   :  { %v70_v2 = vld [vmem:[#allocation3 + $0x10] sm:$0xff]  ;;  %v71_v3 = vld [vmem:[#allocation3 + $0x18] sm:$0xff]  ;;  %v72_v4 = vld [vmem:[#allocation3 + $0x20] sm:$0xff]  ;;  %v84_v6 = vmul.f32 0.5, %v68_v0  ;;  %v85_v7 = vmul.f32 0.5, %v69_v1 }
  0x27   :  { %v73_v5 = vld [vmem:[#allocation3 + $0x28] sm:$0xff]  ;;  %v86_v8 = vmul.f32 0.5, %v70_v2  ;;  %v74_v9 = vld [vmem:[#allocation3 + $0x30] sm:$0xff]  ;;  %v87_v10 = vmul.f32 0.5, %v71_v3  ;;  %v75_v11 = vld [vmem:[#allocation3 + $0x38] sm:$0xff]  ;;  %v88_v14 = vmul.f32 0.5, %v72_v4 }
  0x28   :  { %v76_v12 = vld [vmem:[#allocation5] sm:$0xff]  ;;  %v77_v13 = vld [vmem:[#allocation5 + $0x8] sm:$0xff]  ;;  %287 = vtanh.f32 %v84_v6  ;;  %v89_v15 = vmul.f32 0.5, %v73_v5  ;;  %v78_v17 = vld [vmem:[#allocation5 + $0x10] sm:$0xff]  ;;  %v90_v18 = vmul.f32 0.5, %v74_v9  ;;  %v91_v19 = vmul.f32 0.5, %v75_v11 }
  0x29   :  { %289 = vtanh.f32 %v85_v7  ;;  %v153_v16 = vadd.f32 %v77_v13, %v76_v12  ;;  %v79_v21 = vld [vmem:[#allocation5 + $0x18] sm:$0xff]  ;;  %v80_v23 = vld [vmem:[#allocation5 + $0x20] sm:$0xff]  ;;  %v81_v25 = vld [vmem:[#allocation5 + $0x28] sm:$0xff] }
  0x2a   :  { %291 = vtanh.f32 %v86_v8  ;;  %v82_v31 = vld [vmem:[#allocation5 + $0x30] sm:$0xff]  ;;  %v83_v45 = vld [vmem:[#allocation5 + $0x38] sm:$0xff] }
  0x2b   :  { %293 = vtanh.f32 %v87_v10  ;;  %v154_v20 = vadd.f32 %v153_v16, %v78_v17 }
  0x2c   :  { %295 = vtanh.f32 %v88_v14 }
  0x2d   :  { %297 = vtanh.f32 %v89_v15  ;;  %v155_v22 = vadd.f32 %v154_v20, %v79_v21 }
  0x2e   :  { %299 = vtanh.f32 %v90_v18 }
  0x2f   :  { %301 = vtanh.f32 %v91_v19  ;;  %v156_v24 = vadd.f32 %v155_v22, %v80_v23 }
  0x31   :  { %v157_v26 = vadd.f32 %v156_v24, %v81_v25 }
  0x32   :  { %v288_v27 = vpop.eup %287 }
  0x33   :  { %v290_v28 = vpop.eup %289  ;;  %v100_v29 = vmul.f32 0.5, %v288_v27  ;;  %v158_v36 = vadd.f32 %v157_v26, %v82_v31 }
  0x34   :  { %v292_v30 = vpop.eup %291  ;;  %v101_v32 = vmul.f32 0.5, %v290_v28 }
  0x35   :  { %v294_v33 = vpop.eup %293  ;;  %v102_v34 = vmul.f32 0.5, %v292_v30  ;;  %v108_v35 = vadd.f32 0.5, %v100_v29  ;;  %v159_v54 = vadd.f32 %v158_v36, %v83_v45 }
  0x36   :  { %v296_v37 = vpop.eup %295  ;;  %v103_v38 = vmul.f32 0.5, %v294_v33  ;;  %v109_v39 = vadd.f32 0.5, %v101_v32 }
  0x37   :  { %v298_v40 = vpop.eup %297  ;;  %v104_v41 = vmul.f32 0.5, %v296_v37  ;;  %v110_v42 = vadd.f32 0.5, %v102_v34  ;;  %v123_v43 = vmul.f32 %v108_v35, %v76_v12  ;;  %v258_v0 = vrot.slane %v159_v54, 4 }
  0x38   :  { %v300_v44 = vpop.eup %299  ;;  %v105_v46 = vmul.f32 0.5, %v298_v40  ;;  %v111_v47 = vadd.f32 0.5, %v103_v38  ;;  %v124_v48 = vmul.f32 %v109_v39, %v77_v13  ;;  %v142_v49 = vadd.f32 %v109_v39, %v108_v35 }
  0x39   :  { %v302_v50 = vpop.eup %301  ;;  %v106_v51 = vmul.f32 0.5, %v300_v44  ;;  %v112_v52 = vadd.f32 0.5, %v104_v41  ;;  %v125_v53 = vmul.f32 %v110_v42, %v78_v17  ;;  %v259_v8 = vadd.f32 %v258_v0, %v159_v54 }
  0x3a   :  { %v107_v55 = vmul.f32 0.5, %v302_v50  ;;  %v113_v56 = vadd.f32 0.5, %v105_v46  ;;  %v126_v57 = vmul.f32 %v111_v47, %v79_v21  ;;  %v131_v58 = vadd.f32 %v124_v48, %v123_v43 }
  0x3b   :  { %v143_v59 = vadd.f32 %v142_v49, %v110_v42  ;;  %v114_v60 = vadd.f32 0.5, %v106_v51  ;;  %v127_v61 = vmul.f32 %v112_v52, %v80_v23  ;;  %v260_v14 = vrot.slane %v259_v8, 2 }
  0x3c   :  { %v132_v62 = vadd.f32 %v131_v58, %v125_v53  ;;  %v115_v1 = vadd.f32 0.5, %v107_v55  ;;  %v128_v2 = vmul.f32 %v113_v56, %v81_v25 }
  0x3d   :  { %v144_v63 = vadd.f32 %v143_v59, %v111_v47  ;;  %v129_v5 = vmul.f32 %v114_v60, %v82_v31  ;;  %v261_v19 = vadd.f32 %v260_v14, %v259_v8 }
  0x3e   :  { %v133_v3 = vadd.f32 %v132_v62, %v126_v57  ;;  %v130_v9 = vmul.f32 %v115_v1, %v83_v45 }
  0x3f   :  { %v145_v4 = vadd.f32 %v144_v63, %v112_v52  ;;  %v262_v24 = vrot.slane %v261_v19, 1 }
  0x40   :  { %v134_v6 = vadd.f32 %v133_v3, %v127_v61 }
  0x41   :  { %v146_v7 = vadd.f32 %v145_v4, %v113_v56  ;;  %v263_v29 = vadd.f32 %v262_v24, %v261_v19 }
  0x42   :  { %v135_v10 = vadd.f32 %v134_v6, %v128_v2 }
  0x43   :  { %v147_v11 = vadd.f32 %v146_v7, %v114_v60 }
  0x44   :  { %v136_v12 = vadd.f32 %v135_v10, %v129_v5 }
  0x45   :  { %v148_v13 = vadd.f32 %v147_v11, %v115_v1 }
  0x46   :  { %v137_v15 = vadd.f32 %v136_v12, %v130_v9 }
  0x47   :  { %v252_v16 = vrot.slane %v148_v13, 4 }
  0x48   :  { %v246_v17 = vrot.slane %v137_v15, 4 }
  0x49   :  { %v253_v18 = vadd.f32 %v252_v16, %v148_v13 }
  0x4a   :  { %v247_v20 = vadd.f32 %v246_v17, %v137_v15 }
  0x4b   :  { %v254_v21 = vrot.slane %v253_v18, 2 }
  0x4c   :  { %v248_v22 = vrot.slane %v247_v20, 2 }
  0x4d   :  { %v255_v23 = vadd.f32 %v254_v21, %v253_v18 }
  0x4e   :  { %v249_v25 = vadd.f32 %v248_v22, %v247_v20 }
  0x4f   :  { %v256_v26 = vrot.slane %v255_v23, 1 }
  0x50   :  { %v250_v27 = vrot.slane %v249_v25, 1 }
  0x51   :  { %v257_v28 = vadd.f32 %v256_v26, %v255_v23 }
  0x52   :  { %v251_v30 = vadd.f32 %v250_v27, %v249_v25 }
  0x54   :  { %v268_v31 = vsel %vm267_vm0, %v257_v28, %v251_v30 }
  0x55   :  { %v270_v32 = vsel %vm269_vm1, %v263_v29, %v268_v31 }
  0x56   :  { %272 = vst [vmem:[%s399_s2] sm:$0x7] %v270_v32 }
  0x57   :  { %277 = vsyncpa [#allocation4], 1 }
  0x58   :  { %278 = vsyncpa [#allocation6], 1 }

</bundles_post_ra>
